<compile_context>
chip_gen: v5e
topology: v5e:2x2
jax: 0.10.0
libtpu: 0.0.40
codegen_flags: <defaults>
</compile_context>

<pallas_src>
import functools

import jax
import jax.numpy as jnp
from jax.experimental import pallas as pl
from jax.experimental.pallas import tpu as pltpu


def _cdiv(a, b):
    return -(-a // b)


def _round_up(x, m):
    return _cdiv(x, m) * m


def _tpu_config():
    """(num_partials, f32 block bytes per input, vmem_limit_bytes) per TPU gen."""
    kind = ""
    try:
        kind = jax.devices()[0].device_kind.lower()
    except Exception:
        pass
    if "v7" in kind or "7x" in kind:
        # 2 TensorCores / chip, 3.2 TB/s HBM, 64 MiB VMEM per TC.
        return 2, 6 << 20, 56 << 20
    if "v6" in kind:
        return 1, 4 << 20, 64 << 20
    if "v5p" in kind or "v4" in kind:
        return 1, 4 << 20, 64 << 20
    # v5e / unknown: conservative.
    return 1, 2 << 20, 32 << 20


def _kl_kernel(mu_ref, lv_ref, acc_ref, *, rows, tm, tiles_per_partial, lanes,
               has_boundary):
    c = pl.program_id(0)          # parallel partial (TensorCore shard)
    i = pl.program_id(1)          # sequential accumulation step

    @pl.when(i == 0)
    def _init():
        acc_ref[...] = jnp.zeros_like(acc_ref)

    mu = mu_ref[...].astype(jnp.float32)
    lv = lv_ref[...].astype(jnp.float32)
    vals = mu * mu + jnp.exp(lv) - lv          # hot path: 3 VALU + 1 EUP / elem

    def accumulate(v):
        if tm % 8 == 0:
            # Pure vreg+vreg VPU adds into the resident (8, lanes) partial sum.
            acc_ref[...] += jnp.sum(v.reshape(-1, 8, lanes), axis=0)
        else:
            # Tiny single-tile case (tm == rows, not a multiple of 8): one
            # cheap sublane fold into a (1, lanes) accumulator.
            acc_ref[...] += jnp.sum(v, axis=0, keepdims=True)

    if not has_boundary:
        accumulate(vals)                        # interior-only grid: no mask at all
    else:
        row0 = (c * tiles_per_partial + i) * tm
        interior = row0 + tm <= rows

        @pl.when(interior)
        def _fast():                            # interior tiles: unmasked
            accumulate(vals)

        @pl.when(jnp.logical_not(interior))
        def _boundary():                        # only the boundary/OOB tiles
            rid = row0 + jax.lax.broadcasted_iota(jnp.int32, (tm, 1), 0)
            accumulate(jnp.where(rid < rows, vals, 0.0))


def regularize_loss(mu, logvar, *, block_bytes=None, num_partials=None):
    """0.5 * mean(mu**2 + exp(logvar) - logvar), computed with a Pallas kernel."""
    if mu is None or logvar is None:
        return 0   # matches the PyTorch module's behaviour
    assert mu.ndim == 3 and logvar.ndim == 3
    assert mu.shape == logvar.shape
    total = mu.size

    cfg_np, cfg_block, vmem_limit = _tpu_config()
    if block_bytes is None:
        block_bytes = cfg_block
    if num_partials is None:
        num_partials = cfg_np

    # ---- lane-dense 2-D view (copy-free whenever total % 128 == 0) ----------
    mu_flat = mu.reshape(-1)
    lv_flat = logvar.reshape(-1)
    pad = 0
    lanes = next((c for c in (512, 256, 128) if total % c == 0), None)
    if lanes is None:
        # Rare fallback: total not a multiple of 128.  Pad the tail with < 128
        # zeros; each padded element contributes exactly mu^2 + exp(0) - 0 = 1.0
        # and is subtracted back in the epilogue.  Only this path copies inputs.
        lanes = 128
        pad = (-total) % lanes
        mu_flat = jnp.pad(mu_flat, (0, pad))
        lv_flat = jnp.pad(lv_flat, (0, pad))
    rows = (total + pad) // lanes
    mu2 = mu_flat.reshape(rows, lanes)
    lv2 = lv_flat.reshape(rows, lanes)

    # ---- tile sizing (f32 working-set byte budget, dtype-aware granule) -----
    min_itemsize = min(mu.dtype.itemsize, logvar.dtype.itemsize)
    sub = max(8, 32 // min_itemsize)                       # 8 f32 / 16 bf16 / 32 i8
    budget_tm = max(sub, (block_bytes // (lanes * 4)) // sub * sub)

    np_ = num_partials
    if rows < 2 * sub * np_:
        np_ = 1                                            # too small to split
    num_tiles = _round_up(_cdiv(rows, budget_tm), np_)
    tm = _round_up(_cdiv(rows, num_tiles), sub)
    num_tiles = _cdiv(rows, tm)
    if num_tiles == 1:
        np_, tm = 1, rows                                  # single full-dim block
    tiles_per_partial = _cdiv(num_tiles, np_)

    has_boundary = np_ * tiles_per_partial * tm > rows     # any partial/OOB tile?
    needs_clamp = np_ * tiles_per_partial > num_tiles      # avoid fully-OOB DMA
    acc_rows = 8 if tm % 8 == 0 else 1

    def in_map(c, i):
        t = c * tiles_per_partial + i
        if needs_clamp:                                    # static Python check
            t = jnp.minimum(t, num_tiles - 1)
        return (t, 0)

    kernel = functools.partial(
        _kl_kernel, rows=rows, tm=tm, tiles_per_partial=tiles_per_partial,
        lanes=lanes, has_boundary=has_boundary)

    partials = pl.pallas_call(
        kernel,
        out_shape=jax.ShapeDtypeStruct((np_, acc_rows, lanes), jnp.float32),
        grid_spec=pltpu.PrefetchScalarGridSpec(
            num_scalar_prefetch=0,
            grid=(np_, tiles_per_partial),
            in_specs=[
                pl.BlockSpec((tm, lanes), in_map),
                pl.BlockSpec((tm, lanes), in_map),
            ],
            out_specs=pl.BlockSpec((None, acc_rows, lanes),
                                   lambda c, i: (c, 0, 0)),
        ),
        compiler_params=pltpu.CompilerParams(
            dimension_semantics=("parallel", "arbitrary"),
            vmem_limit_bytes=vmem_limit,
        ),
    )(mu2, lv2)

    # Single cross-lane/sublane reduce + pad correction + mean + 0.5 scaling.
    return 0.5 * (jnp.sum(partials) - pad) / total


def regularize_loss_ref(mu, logvar):
    lv = logvar.astype(jnp.float32)
    return 0.5 * jnp.mean(mu.astype(jnp.float32) ** 2 + jnp.exp(lv) - lv)


if __name__ == "__main__":
    key = jax.random.PRNGKey(0)
    k1, k2 = jax.random.split(key)

    # Primary small case matching the module's 3-D (B, S, D) contract.
    B, S, D = 2, 8, 32
    mu = jax.random.normal(k1, (B, S, D), dtype=jnp.float32)
    logvar = jax.random.normal(k2, (B, S, D), dtype=jnp.float32) * 0.5
    loss = jax.block_until_ready(regularize_loss(mu, logvar))
    ref = jax.block_until_ready(regularize_loss_ref(mu, logvar))
    assert jnp.allclose(loss, ref, rtol=1e-5, atol=1e-5), (loss, ref)

    # Multi-tile + masked boundary-tile path (small block override keeps it small).
    k3, k4 = jax.random.split(k1)
    mu_b = jax.random.normal(k3, (4, 25, 512), dtype=jnp.float32)
    lv_b = jax.random.normal(k4, (4, 25, 512), dtype=jnp.float32) * 0.5
    loss_b = jax.block_until_ready(
        regularize_loss(mu_b, lv_b, block_bytes=64 * 1024))
    ref_b = jax.block_until_ready(regularize_loss_ref(mu_b, lv_b))
    assert jnp.allclose(loss_b, ref_b, rtol=1e-5, atol=1e-5), (loss_b, ref_b)

    # Non-128-divisible fallback path (tiny tail pad, corrected in epilogue).
    k5, k6 = jax.random.split(k2)
    mu_c = jax.random.normal(k5, (2, 9, 40), dtype=jnp.float32)
    lv_c = jax.random.normal(k6, (2, 9, 40), dtype=jnp.float32) * 0.5
    loss_c = jax.block_until_ready(regularize_loss(mu_c, lv_c))
    ref_c = jax.block_until_ready(regularize_loss_ref(mu_c, lv_c))
    assert jnp.allclose(loss_c, ref_c, rtol=1e-5, atol=1e-5), (loss_c, ref_c)

    print("KERNEL_OK")
</pallas_src>

<mosaic_0001>
module attributes {stable_mosaic.version = 11 : i64} {
  func.func @_kl_kernel(%arg0: i32, %arg1: i32, %arg2: memref<1x512xf32, #tpu.memory_space<vmem>>, %arg3: memref<1x512xf32, #tpu.memory_space<vmem>>, %arg4: memref<1x1x512xf32, #tpu.memory_space<vmem>>) attributes {dimension_semantics = [#tpu.dimension_semantics<parallel>, #tpu.dimension_semantics<arbitrary>], iteration_bounds = array<i64: 1, 1>, scalar_prefetch = 0 : i64, scratch_operands = 0 : i64, tpu.core_type = #tpu.core_type<tc>, window_params = [{transform_indices = @transform_0, window_bounds = array<i64: 1, 512>}, {transform_indices = @transform_1, window_bounds = array<i64: 1, 512>}, {transform_indices = @transform_2, window_bounds = array<i64: 1, 1, 512>}]} {
    %c0_i32 = arith.constant 0 : i32
    %0 = arith.cmpi eq, %arg1, %c0_i32 : i32
    %1 = arith.extui %0 : i1 to i32
    %c0_i32_0 = arith.constant 0 : i32
    %2 = arith.cmpi ne, %1, %c0_i32_0 : i32
    scf.if %2 {
      %cst_10 = arith.constant 0.000000e+00 : f32
      %17 = vector.broadcast %cst_10 : f32 to vector<1x512xf32>
      %c0_11 = arith.constant 0 : index
      %c0_12 = arith.constant 0 : index
      %c0_13 = arith.constant 0 : index
      %18 = vector.load %arg4[%c0_11, %c0_12, %c0_13] : memref<1x1x512xf32, #tpu.memory_space<vmem>>, vector<1x1x512xf32>
      %19 = vector.shape_cast %18 : vector<1x1x512xf32> to vector<1x512xf32>
      %20 = vector.shape_cast %17 : vector<1x512xf32> to vector<1x1x512xf32>
      tpu.vector_store %arg4[%c0_11, %c0_12, %c0_13], %20 {strides = array<i32>} : memref<1x1x512xf32, #tpu.memory_space<vmem>>, vector<1x1x512xf32>,
    } else {
    }
    %c0 = arith.constant 0 : index
    %c0_1 = arith.constant 0 : index
    %3 = vector.load %arg2[%c0, %c0_1] : memref<1x512xf32, #tpu.memory_space<vmem>>, vector<1x512xf32>
    %c0_2 = arith.constant 0 : index
    %c0_3 = arith.constant 0 : index
    %4 = vector.load %arg3[%c0_2, %c0_3] : memref<1x512xf32, #tpu.memory_space<vmem>>, vector<1x512xf32>
    %5 = arith.mulf %3, %3 : vector<1x512xf32>
    %6 = math.exp %4 : vector<1x512xf32>
    %7 = arith.addf %5, %6 : vector<1x512xf32>
    %8 = arith.subf %7, %4 : vector<1x512xf32>
    %c0_4 = arith.constant 0 : index
    %c0_5 = arith.constant 0 : index
    %c0_6 = arith.constant 0 : index
    %9 = vector.load %arg4[%c0_4, %c0_5, %c0_6] : memref<1x1x512xf32, #tpu.memory_space<vmem>>, vector<1x1x512xf32>
    %10 = vector.shape_cast %9 : vector<1x1x512xf32> to vector<1x512xf32>
    %cst = arith.constant dense<0.000000e+00> : vector<512xf32>
    %11 = vector.multi_reduction <add>, %8, %cst [0] : vector<1x512xf32> to vector<512xf32>
    %12 = vector.shape_cast %11 : vector<512xf32> to vector<1x512xf32>
    %13 = arith.addf %10, %12 : vector<1x512xf32>
    %c0_7 = arith.constant 0 : index
    %c0_8 = arith.constant 0 : index
    %c0_9 = arith.constant 0 : index
    %14 = vector.load %arg4[%c0_7, %c0_8, %c0_9] : memref<1x1x512xf32, #tpu.memory_space<vmem>>, vector<1x1x512xf32>
    %15 = vector.shape_cast %14 : vector<1x1x512xf32> to vector<1x512xf32>
    %16 = vector.shape_cast %13 : vector<1x512xf32> to vector<1x1x512xf32>
    tpu.vector_store %arg4[%c0_7, %c0_8, %c0_9], %16 {strides = array<i32>} : memref<1x1x512xf32, #tpu.memory_space<vmem>>, vector<1x1x512xf32>,
    return
  }
  func.func @transform_0(%arg0: i32, %arg1: i32) -> (i32, i32) {
    %c1_i32 = arith.constant 1 : i32
    %0 = arith.muli %arg0, %c1_i32 : i32
    %1 = arith.addi %0, %arg1 : i32
    %c0_i32 = arith.constant 0 : i32
    %c0_i32_0 = arith.constant 0 : i32
    return %1, %c0_i32 : i32, i32
  }
  func.func @transform_1(%arg0: i32, %arg1: i32) -> (i32, i32) {
    %c1_i32 = arith.constant 1 : i32
    %0 = arith.muli %arg0, %c1_i32 : i32
    %1 = arith.addi %0, %arg1 : i32
    %c0_i32 = arith.constant 0 : i32
    %c0_i32_0 = arith.constant 0 : i32
    return %1, %c0_i32 : i32, i32
  }
  func.func @transform_2(%arg0: i32, %arg1: i32) -> (i32, i32, i32) {
    %c0_i32 = arith.constant 0 : i32
    %c0_i32_0 = arith.constant 0 : i32
    %c0_i32_1 = arith.constant 0 : i32
    return %arg0, %c0_i32, %c0_i32_0 : i32, i32, i32
  }
}

</mosaic_0001>

<bundles_post_ra>
// kernel: tpu_custom_call.1
= control target key start
LH: loop header
LB: loop body
LE: loop exit
PB: predicated region body
PF: predicated region fallthrough
CT: control target
= control target key end

     0   :  { %7 = vsyncpa [#allocation3], 0  ;;  %s210_s0 = inlined_call_operand.hbm [shape: f32[1,512], index: 0, kind: input, shape index: {}]   ;;  %s211_s1 = inlined_call_operand.hbm [shape: f32[1,512], index: 1, kind: input, shape index: {}]   ;;  %s212_s2 = inlined_call_operand.hbm [shape: f32[1,1,512], index: 2, kind: output, shape index: {}]  }
   0x1   :  { %8 = vsyncpa [#allocation6], 0 }
   0x2   :  { %9 = vsyncpa [#allocation4], 0  ;;  %s18_s11 = sshll.u32 %s210_s0, 4  ;;  %s174_s12 = smov [#allocation2]   ;;  %s19_s11 = int_to_ptr.hbm [resolvable:$true] %s18_s11 }
   0x3   :  { %s20_s13 = sshll.u32 %s174_s12, 4  ;;  %s32_s16 = sshll.u32 %s211_s1, 4  ;;  %s21_s13 = int_to_ptr.vmem [resolvable:$true] %s20_s13  ;;  %s33_s16 = int_to_ptr.hbm [resolvable:$true] %s32_s16 }
   0x4   :  { %23 = dma.hbm_to_vmem [thread:$0]  %s19_s11, 64, %s21_s13, [#allocation3]  }
   0x5   :  { %s175_s17 = smov [#allocation5]  }
   0x6   :  { %s34_s18 = sshll.u32 %s175_s17, 4  ;;  %s35_s18 = int_to_ptr.vmem [resolvable:$true] %s34_s18 }
   0x7   :  { %37 = dma.hbm_to_vmem [thread:$0]  %s33_s16, 64, %s35_s18, [#allocation6]  }
   0x8   :  { %168 = dma.done.wait [#allocation3], 64  }
   0x9   :  { %169 = vsyncadd [#allocation3], 4294967232 }
   0xa   :  { %170 = dma.done.wait [#allocation6], 64  }
   0xb   :  { %171 = vsyncadd [#allocation6], 4294967232  ;;  %v52_v0 = vlaneseq  ;;  %v176_v2 = vmov 0.0   ;;  %v58_v3 = vld [vmem:[#allocation5] sm:$0xf]  ;;  %s177_s0 = smov [#allocation7]  }
   0xc   :  { %v60_v4 = vmul.f32 1.442695, %v58_v3  ;;  %v57_v5 = vld [vmem:[#allocation2] sm:$0xf]  ;;  %s77_s1 = sshll.u32 %s177_s0, 4  ;;  %s79_s21 = sshll.u32 %s212_s2, 4  ;;  %s78_s1 = int_to_ptr.vmem [resolvable:$true] %s77_s1  ;;  %s80_s21 = int_to_ptr.hbm [resolvable:$true] %s79_s21 }
   0xd   :  { %vm199_vm0 = vcmp.lt.s32.totalorder %v52_v0, 512  ;;  %v59_v6 = vmul.f32 %v57_v5, %v57_v5 }
   0xe   :  { %56 = vst.msk [vmem:[#allocation7] sm:$0xf] %vm199_vm0, %v176_v2  ;;  %94 = vpow2.f32 %v60_v4 }
  0x14   :  { %v95_v7 = vpop.eup %94 }
  0x15   :  { %v62_v8 = vadd.f32 %v95_v7, %v59_v6  ;;  %v64_v9 = vld [vmem:[#allocation7] sm:$0xf] }
  0x17   :  { %v63_v10 = vsub.f32 %v62_v8, %v58_v3 }
  0x19   :  { %v66_v11 = vadd.f32 %v64_v9, %v63_v10 }
  0x1b   :  { %71 = vst.msk [vmem:[#allocation7] sm:$0xf] %vm199_vm0, %v66_v11 }
  0x1c   :  { %82 = dma.vmem_to_hbm [thread:$0]  %s78_s1, 64, %s80_s21, [#allocation4]  }
  0x1d   :  { %172 = dma.done.wait [#allocation4], 64  }
  0x1e   :  { %173 = vsyncadd [#allocation4], 4294967232 }
  0x1f   :  { %87 = vsyncpa [#allocation3], 1 }
  0x20   :  { %88 = vsyncpa [#allocation6], 1 }
  0x21   :  { %89 = vsyncpa [#allocation4], 1 }

</bundles_post_ra>
